<compile_context>
chip_gen: v5e
topology: v5e:2x2
jax: 0.10.0
libtpu: 0.0.40
codegen_flags: <defaults>
</compile_context>

<pallas_src>
import functools

import jax
import jax.numpy as jnp
from jax.experimental import pallas as pl
from jax.experimental.pallas import tpu as pltpu


def _round_up(x, m):
    return ((x + m - 1) // m) * m


def _amsoftmax_kernel(cos_ref, tgt_ref, nll_ref, m_sc, l_sc, t_sc,
                      *, scale, margin, num_classes, block_c):
    j = pl.program_id(1)                       # class-tile index (reduction axis)

    @pl.when(j == 0)
    def _():
        m_sc[...] = jnp.full(m_sc.shape, -jnp.inf, jnp.float32)
        l_sc[...] = jnp.zeros(l_sc.shape, jnp.float32)
        t_sc[...] = jnp.zeros(t_sc.shape, jnp.float32)

    cos = cos_ref[...].astype(jnp.float32)     # [TB, TC] upcast in-register
    tgt = tgt_ref[...]                         # [TB, 1] int32
    tb, tc = cos.shape

    # Global class index per lane in this tile; mask padding columns.
    col = jax.lax.broadcasted_iota(jnp.int32, (tb, tc), 1) + j * block_c
    valid = col < num_classes
    onehot = jnp.logical_and(col == tgt, valid)

    logits = (cos - margin * onehot.astype(jnp.float32)) * scale
    logits = jnp.where(valid, logits, -jnp.inf)

    # Online logsumexp update (running max m, running exp-sum l).
    m_old = m_sc[...]
    m_new = jnp.maximum(m_old, jnp.max(logits, axis=1, keepdims=True))
    alpha = jnp.exp(m_old - m_new)
    p = jnp.where(valid, jnp.exp(logits - m_new), 0.0)

    l_sc[...] = alpha * l_sc[...] + jnp.sum(p, axis=1, keepdims=True)
    t_sc[...] = t_sc[...] + jnp.sum(jnp.where(onehot, logits, 0.0),
                                    axis=1, keepdims=True)
    m_sc[...] = m_new

    @pl.when(j == pl.num_programs(1) - 1)
    def _():
        lse = m_sc[...] + jnp.log(l_sc[...])
        nll_ref[...] = (lse - t_sc[...]).astype(nll_ref.dtype)   # -logpt per row


def amsoftmax_loss(cos_theta, target, scale=10.0, margin=0.35,
                   block_b=256, block_c=2048):
    """cos_theta: [B, C] f32/bf16, target: [B] int. Returns scalar f32 loss."""
    b, c = cos_theta.shape
    tb = min(block_b, _round_up(b, 8))
    tc = min(block_c, _round_up(c, 128))
    bp = _round_up(b, tb)
    cp = _round_up(c, tc)

    cos_p = cos_theta
    if (bp, cp) != (b, c):
        cos_p = jnp.pad(cos_theta, ((0, bp - b), (0, cp - c)))
    tgt_p = target.reshape(b, 1).astype(jnp.int32)
    if bp != b:
        tgt_p = jnp.pad(tgt_p, ((0, bp - b), (0, 0)))

    kernel = functools.partial(
        _amsoftmax_kernel, scale=float(scale), margin=float(margin),
        num_classes=c, block_c=tc)

    nll = pl.pallas_call(
        kernel,
        out_shape=jax.ShapeDtypeStruct((bp, 1), jnp.float32),
        grid_spec=pltpu.PrefetchScalarGridSpec(
            num_scalar_prefetch=0,
            grid=(bp // tb, cp // tc),
            in_specs=[
                pl.BlockSpec((tb, tc), lambda i, j: (i, j)),   # cos_theta tiles
                pl.BlockSpec((tb, 1), lambda i, j: (i, 0)),    # targets per row
            ],
            out_specs=pl.BlockSpec((tb, 1), lambda i, j: (i, 0)),
            scratch_shapes=[pltpu.VMEM((tb, 1), jnp.float32)] * 3,  # m, l, tgt-logit
        ),
        compiler_params=pltpu.CompilerParams(
            dimension_semantics=("parallel", "arbitrary")),
    )(cos_p, tgt_p)

    # Mean of per-row NLL over real (un-padded) rows, done on the host side
    # of the kernel so batch tiles stay independent.
    return jnp.mean(nll[:b, 0])


def amsoftmax_ref(cos_theta, target, scale=10.0, margin=0.35):
    """Pure-JAX reference mirroring the PyTorch forward."""
    c = cos_theta.shape[1]
    onehot = jax.nn.one_hot(target, c, dtype=jnp.float32)
    logits = (cos_theta.astype(jnp.float32) - margin * onehot) * scale
    logp = jax.nn.log_softmax(logits, axis=1)
    return jnp.mean(-jnp.sum(logp * onehot, axis=1))


if __name__ == "__main__":
    key = jax.random.PRNGKey(0)
    k1, k2, k3, k4 = jax.random.split(key, 4)

    # Case 1: small toy shape (single tile).
    B, C = 8, 32
    cos = jnp.tanh(jax.random.normal(k1, (B, C), dtype=jnp.float32))
    tgt = jax.random.randint(k2, (B,), 0, C, dtype=jnp.int32)
    loss = jax.block_until_ready(amsoftmax_loss(cos, tgt, scale=10.0, margin=0.35))
    ref = amsoftmax_ref(cos, tgt, scale=10.0, margin=0.35)
    assert jnp.allclose(loss, ref, rtol=1e-5, atol=1e-5), (loss, ref)

    # Case 2: non-aligned shapes + small tiles to exercise the multi-tile
    # online-logsumexp path (grid = 2 batch tiles x 3 class tiles, with
    # both batch and class padding masked out).
    B2, C2 = 10, 300
    cos2 = jnp.tanh(jax.random.normal(k3, (B2, C2), dtype=jnp.float32))
    tgt2 = jax.random.randint(k4, (B2,), 0, C2, dtype=jnp.int32)
    loss2 = jax.block_until_ready(
        amsoftmax_loss(cos2, tgt2, block_b=8, block_c=128))
    ref2 = amsoftmax_ref(cos2, tgt2)
    assert jnp.allclose(loss2, ref2, rtol=1e-5, atol=1e-5), (loss2, ref2)

    # Case 3: bf16 on the wire, upcast to f32 inside the kernel.
    cos3 = cos2.astype(jnp.bfloat16)
    loss3 = jax.block_until_ready(
        amsoftmax_loss(cos3, tgt2, block_b=8, block_c=128))
    ref3 = amsoftmax_ref(cos3.astype(jnp.float32), tgt2)
    assert jnp.allclose(loss3, ref3, rtol=1e-5, atol=1e-5), (loss3, ref3)

    print("KERNEL_OK")
</pallas_src>

<mosaic_0001>
module attributes {stable_mosaic.version = 11 : i64} {
  func.func @_amsoftmax_kernel(%arg0: i32, %arg1: i32, %arg2: memref<8x128xf32, #tpu.memory_space<vmem>>, %arg3: memref<8x1xi32, #tpu.memory_space<vmem>>, %arg4: memref<8x1xf32, #tpu.memory_space<vmem>>, %arg5: memref<8x1xf32, #tpu.memory_space<vmem>>, %arg6: memref<8x1xf32, #tpu.memory_space<vmem>>, %arg7: memref<8x1xf32, #tpu.memory_space<vmem>>) attributes {dimension_semantics = [#tpu.dimension_semantics<parallel>, #tpu.dimension_semantics<arbitrary>], iteration_bounds = array<i64: 1, 1>, scalar_prefetch = 0 : i64, scratch_operands = 3 : i64, tpu.core_type = #tpu.core_type<tc>, window_params = [{transform_indices = @transform_0, window_bounds = array<i64: 8, 128>}, {transform_indices = @transform_1, window_bounds = array<i64: 8, 1>}, {transform_indices = @transform_2, window_bounds = array<i64: 8, 1>}]} {
    %c0_i32 = arith.constant 0 : i32
    %0 = arith.cmpi eq, %arg1, %c0_i32 : i32
    %1 = arith.extui %0 : i1 to i32
    %c0_i32_0 = arith.constant 0 : i32
    %2 = arith.cmpi ne, %1, %c0_i32_0 : i32
    scf.if %2 {
      %cst_25 = arith.constant 0xFF800000 : f32
      %51 = vector.broadcast %cst_25 : f32 to vector<8x1xf32>
      %c0_26 = arith.constant 0 : index
      %c0_27 = arith.constant 0 : index
      %52 = vector.load %arg5[%c0_26, %c0_27] : memref<8x1xf32, #tpu.memory_space<vmem>>, vector<8x1xf32>
      tpu.vector_store %arg5[%c0_26, %c0_27], %51 {strides = array<i32>} : memref<8x1xf32, #tpu.memory_space<vmem>>, vector<8x1xf32>,
      %cst_28 = arith.constant 0.000000e+00 : f32
      %53 = vector.broadcast %cst_28 : f32 to vector<8x1xf32>
      %c0_29 = arith.constant 0 : index
      %c0_30 = arith.constant 0 : index
      %54 = vector.load %arg6[%c0_29, %c0_30] : memref<8x1xf32, #tpu.memory_space<vmem>>, vector<8x1xf32>
      tpu.vector_store %arg6[%c0_29, %c0_30], %53 {strides = array<i32>} : memref<8x1xf32, #tpu.memory_space<vmem>>, vector<8x1xf32>,
      %cst_31 = arith.constant 0.000000e+00 : f32
      %55 = vector.broadcast %cst_31 : f32 to vector<8x1xf32>
      %c0_32 = arith.constant 0 : index
      %c0_33 = arith.constant 0 : index
      %56 = vector.load %arg7[%c0_32, %c0_33] : memref<8x1xf32, #tpu.memory_space<vmem>>, vector<8x1xf32>
      tpu.vector_store %arg7[%c0_32, %c0_33], %55 {strides = array<i32>} : memref<8x1xf32, #tpu.memory_space<vmem>>, vector<8x1xf32>,
    } else {
    }
    %c0 = arith.constant 0 : index
    %c0_1 = arith.constant 0 : index
    %3 = vector.load %arg2[%c0, %c0_1] : memref<8x128xf32, #tpu.memory_space<vmem>>, vector<8x128xf32>
    %c0_2 = arith.constant 0 : index
    %c0_3 = arith.constant 0 : index
    %4 = vector.load %arg3[%c0_2, %c0_3] : memref<8x1xi32, #tpu.memory_space<vmem>>, vector<8x1xi32>
    %5 = tpu.iota {dimensions = array<i32: 1>} : vector<8x128xi32>
    %c128_i32 = arith.constant 128 : i32
    %6 = arith.muli %arg1, %c128_i32 : i32
    %7 = vector.broadcast %6 : i32 to vector<8x128xi32>
    %8 = arith.addi %5, %7 : vector<8x128xi32>
    %c32_i32 = arith.constant 32 : i32
    %9 = vector.broadcast %c32_i32 : i32 to vector<8x128xi32>
    %10 = arith.cmpi slt, %8, %9 : vector<8x128xi32>
    %11 = vector.broadcast %4 : vector<8x1xi32> to vector<8x128xi32>
    %12 = arith.cmpi eq, %8, %11 : vector<8x128xi32>
    %13 = arith.andi %12, %10 : vector<8x128xi1>
    %14 = arith.extui %13 : vector<8x128xi1> to vector<8x128xi32>
    %15 = arith.sitofp %14 : vector<8x128xi32> to vector<8x128xf32>
    %cst = arith.constant 3.500000e-01 : f32
    %16 = vector.broadcast %cst : f32 to vector<8x128xf32>
    %17 = arith.mulf %16, %15 : vector<8x128xf32>
    %18 = arith.subf %3, %17 : vector<8x128xf32>
    %cst_4 = arith.constant 1.000000e+01 : f32
    %19 = vector.broadcast %cst_4 : f32 to vector<8x128xf32>
    %20 = arith.mulf %18, %19 : vector<8x128xf32>
    %cst_5 = arith.constant 0xFF800000 : f32
    %21 = vector.broadcast %cst_5 : f32 to vector<8x128xf32>
    %22 = arith.select %10, %20, %21 : vector<8x128xi1>, vector<8x128xf32>
    %c0_6 = arith.constant 0 : index
    %c0_7 = arith.constant 0 : index
    %23 = vector.load %arg5[%c0_6, %c0_7] : memref<8x1xf32, #tpu.memory_space<vmem>>, vector<8x1xf32>
    %cst_8 = arith.constant dense<0xFF800000> : vector<8xf32>
    %24 = vector.multi_reduction <maximumf>, %22, %cst_8 [1] : vector<8x128xf32> to vector<8xf32>
    %25 = vector.shape_cast %24 : vector<8xf32> to vector<8x1xf32>
    %26 = arith.maximumf %23, %25 : vector<8x1xf32>
    %27 = arith.subf %23, %26 : vector<8x1xf32>
    %28 = math.exp %27 : vector<8x1xf32>
    %29 = vector.broadcast %26 : vector<8x1xf32> to vector<8x128xf32>
    %30 = arith.subf %22, %29 : vector<8x128xf32>
    %31 = math.exp %30 : vector<8x128xf32>
    %cst_9 = arith.constant 0.000000e+00 : f32
    %32 = vector.broadcast %cst_9 : f32 to vector<8x128xf32>
    %33 = arith.select %10, %31, %32 : vector<8x128xi1>, vector<8x128xf32>
    %c0_10 = arith.constant 0 : index
    %c0_11 = arith.constant 0 : index
    %34 = vector.load %arg6[%c0_10, %c0_11] : memref<8x1xf32, #tpu.memory_space<vmem>>, vector<8x1xf32>
    %35 = arith.mulf %28, %34 : vector<8x1xf32>
    %cst_12 = arith.constant dense<0.000000e+00> : vector<8xf32>
    %36 = vector.multi_reduction <add>, %33, %cst_12 [1] : vector<8x128xf32> to vector<8xf32>
    %37 = vector.shape_cast %36 : vector<8xf32> to vector<8x1xf32>
    %38 = arith.addf %35, %37 : vector<8x1xf32>
    %c0_13 = arith.constant 0 : index
    %c0_14 = arith.constant 0 : index
    %39 = vector.load %arg6[%c0_13, %c0_14] : memref<8x1xf32, #tpu.memory_space<vmem>>, vector<8x1xf32>
    tpu.vector_store %arg6[%c0_13, %c0_14], %38 {strides = array<i32>} : memref<8x1xf32, #tpu.memory_space<vmem>>, vector<8x1xf32>,
    %c0_15 = arith.constant 0 : index
    %c0_16 = arith.constant 0 : index
    %40 = vector.load %arg7[%c0_15, %c0_16] : memref<8x1xf32, #tpu.memory_space<vmem>>, vector<8x1xf32>
    %cst_17 = arith.constant 0.000000e+00 : f32
    %41 = vector.broadcast %cst_17 : f32 to vector<8x128xf32>
    %42 = arith.select %13, %22, %41 : vector<8x128xi1>, vector<8x128xf32>
    %cst_18 = arith.constant dense<0.000000e+00> : vector<8xf32>
    %43 = vector.multi_reduction <add>, %42, %cst_18 [1] : vector<8x128xf32> to vector<8xf32>
    %44 = vector.shape_cast %43 : vector<8xf32> to vector<8x1xf32>
    %45 = arith.addf %40, %44 : vector<8x1xf32>
    %c0_19 = arith.constant 0 : index
    %c0_20 = arith.constant 0 : index
    %46 = vector.load %arg7[%c0_19, %c0_20] : memref<8x1xf32, #tpu.memory_space<vmem>>, vector<8x1xf32>
    tpu.vector_store %arg7[%c0_19, %c0_20], %45 {strides = array<i32>} : memref<8x1xf32, #tpu.memory_space<vmem>>, vector<8x1xf32>,
    %c0_21 = arith.constant 0 : index
    %c0_22 = arith.constant 0 : index
    %47 = vector.load %arg5[%c0_21, %c0_22] : memref<8x1xf32, #tpu.memory_space<vmem>>, vector<8x1xf32>
    tpu.vector_store %arg5[%c0_21, %c0_22], %26 {strides = array<i32>} : memref<8x1xf32, #tpu.memory_space<vmem>>, vector<8x1xf32>,
    %c0_i32_23 = arith.constant 0 : i32
    %48 = arith.cmpi eq, %arg1, %c0_i32_23 : i32
    %49 = arith.extui %48 : i1 to i32
    %c0_i32_24 = arith.constant 0 : i32
    %50 = arith.cmpi ne, %49, %c0_i32_24 : i32
    scf.if %50 {
      %c0_25 = arith.constant 0 : index
      %c0_26 = arith.constant 0 : index
      %51 = vector.load %arg5[%c0_25, %c0_26] : memref<8x1xf32, #tpu.memory_space<vmem>>, vector<8x1xf32>
      %c0_27 = arith.constant 0 : index
      %c0_28 = arith.constant 0 : index
      %52 = vector.load %arg6[%c0_27, %c0_28] : memref<8x1xf32, #tpu.memory_space<vmem>>, vector<8x1xf32>
      %53 = math.log %52 : vector<8x1xf32>
      %54 = arith.addf %51, %53 : vector<8x1xf32>
      %c0_29 = arith.constant 0 : index
      %c0_30 = arith.constant 0 : index
      %55 = vector.load %arg7[%c0_29, %c0_30] : memref<8x1xf32, #tpu.memory_space<vmem>>, vector<8x1xf32>
      %56 = arith.subf %54, %55 : vector<8x1xf32>
      %c0_31 = arith.constant 0 : index
      %c0_32 = arith.constant 0 : index
      %57 = vector.load %arg4[%c0_31, %c0_32] : memref<8x1xf32, #tpu.memory_space<vmem>>, vector<8x1xf32>
      tpu.vector_store %arg4[%c0_31, %c0_32], %56 {strides = array<i32>} : memref<8x1xf32, #tpu.memory_space<vmem>>, vector<8x1xf32>,
    } else {
    }
    return
  }
  func.func @transform_0(%arg0: i32, %arg1: i32) -> (i32, i32) {
    %c0_i32 = arith.constant 0 : i32
    return %arg0, %arg1 : i32, i32
  }
  func.func @transform_1(%arg0: i32, %arg1: i32) -> (i32, i32) {
    %c0_i32 = arith.constant 0 : i32
    %c0_i32_0 = arith.constant 0 : i32
    return %arg0, %c0_i32 : i32, i32
  }
  func.func @transform_2(%arg0: i32, %arg1: i32) -> (i32, i32) {
    %c0_i32 = arith.constant 0 : i32
    %c0_i32_0 = arith.constant 0 : i32
    return %arg0, %c0_i32 : i32, i32
  }
}

</mosaic_0001>

<bundles_post_ra>
// kernel: tpu_custom_call.1
= control target key start
LH: loop header
LB: loop body
LE: loop exit
PB: predicated region body
PF: predicated region fallthrough
CT: control target
= control target key end

     0   :  { %vm15_vm0 = vcmask 7168   ;;  %v95_v0 = vmov 0   ;;  %v96_v2 = vmov 0.0   ;;  %v97_v3 = vmov -inf   ;;  %s132_s1 = inlined_call_operand.vmem [shape: s32[8,1], index: 1, kind: input, shape index: {}]   ;;  %s133_s0 = inlined_call_operand.vmem [shape: f32[8,128], index: 0, kind: input, shape index: {}]   ;;  %s134_s2 = inlined_call_operand.vmem [shape: f32[8,1], index: 2, kind: output, shape index: {}]  }
   0x1   :  { %87 = vset.pattern.permute.xlu0 %v95_v0  ;;  %v20_v1 = vld [vmem:[%s132_s1] sm:$0xff]  ;;  %17 = vst.msk [vmem:[#allocation3] sm:$0xff] %vm15_vm0, %v96_v2  ;;  %88 = vset.pattern.permute.xlu1 %v95_v0  ;;  %v21_v4 = vlaneseq }
   0x2   :  { %28 = vperm.xlu0 %87, %v20_v1   ;;  %18 = vst.msk [vmem:[#allocation4] sm:$0xff] %vm15_vm0, %v96_v2  ;;  %v19_v8 = vld [vmem:[%s133_s0] sm:$0xff] }
   0x3   :  { %16 = vst.msk [vmem:[#allocation2] sm:$0xff] %vm15_vm0, %v97_v3  ;;  %v22_v5 = vand.u32 127, %v21_v4 }
   0x5   :  { %vm26_vm1 = vcmp.lt.s32.totalorder %v22_v5, 32 }
   0x8   :  { %v54_v28 = vld [vmem:[#allocation3] sm:$0xff] }
   0x9   :  { %v61_v15 = vld [vmem:[#allocation4] sm:$0xff] }
   0xa   :  { %v38_v14 = vld [vmem:[#allocation2] sm:$0xff] }
  0x74   :  { %v29_v6 = vpop.permute.xlu0 %28 }
  0x75   :  { %vm30_vm2 = vcmp.eq.s32.totalorder %v22_v5, %v29_v6 }
  0x76   :  { %vm31_vm3 = vmand %vm30_vm2, %vm26_vm1 }
  0x77   :  { %v83_v7 = vsel %vm31_vm3, 1.0, %v96_v2 }
  0x78   :  { %v34_v9 = vmul.f32 0.35, %v83_v7 }
  0x7a   :  { %v35_v10 = vsub.f32 %v19_v8, %v34_v9 }
  0x7c   :  { %v36_v11 = vmul.f32 10.0, %v35_v10 }
  0x7e   :  { %v37_v12 = vsel %vm26_vm1, %v36_v11, -inf }
  0x7f   :  { %39 = vmax.xlane.f32.xlu0 %v37_v12  ;;  %v62_v13 = vsel %vm31_vm3, %v37_v12, 0.0 }
  0x80   :  { %63 = vadd.xlane.f32.xlu2 %v62_v13 }
  0xf2   :  { %v40_v16 = vpop.xlane.xlu0 %39 }
  0xf3   :  { %v41_v17 = vmax.f32 %v38_v14, %v40_v16  ;;  %v64_v18 = vpop.xlane.xlu2 %63 }
  0xf4   :  { %v65_v19 = vadd.f32 %v64_v18, %v61_v15 }
  0xf5   :  { %v42_v20 = vsub.f32 %v38_v14, %v41_v17  ;;  %67 = vst.msk [vmem:[#allocation2] sm:$0xff] %vm15_vm0, %v41_v17  ;;  %47 = vperm.xlu1 %88, %v41_v17  }
  0xf6   :  { %66 = vst.msk [vmem:[#allocation4] sm:$0xff] %vm15_vm0, %v65_v19 }
  0xf7   :  { %v43_v26 = vmul.f32 1.442695, %v42_v20 }
  0xfc   :  { %v71_v35 = vld [vmem:[#allocation2] sm:$0xff] }
  0xfd   :  { %v76_v37 = vld [vmem:[#allocation4] sm:$0xff] }
 0x167   :  { %v48_v21 = vpop.permute.xlu1 %47 }
 0x168   :  { %v50_v22 = vsub.f32 %v37_v12, %v48_v21 }
 0x16a   :  { %v51_v23 = vmul.f32 1.442695, %v50_v22 }
 0x16c   :  { %89 = vpow2.f32 %v51_v23 }
 0x16d   :  { %91 = vpow2.f32 %v43_v26 }
 0x172   :  { %v90_v24 = vpop.eup %89 }
 0x173   :  { %v53_v25 = vsel %vm26_vm1, %v90_v24, 0.0  ;;  %v92_v27 = vpop.eup %91 }
 0x174   :  { %56 = vadd.xlane.f32.xlu1 %v53_v25  ;;  %v55_v29 = vmul.f32 %v92_v27, %v54_v28 }
 0x1e7   :  { %v57_v30 = vpop.xlane.xlu1 %56 }
 0x1e8   :  { %v58_v31 = vadd.f32 %v57_v30, %v55_v29 }
 0x1ea   :  { %60 = vst.msk [vmem:[#allocation3] sm:$0xff] %vm15_vm0, %v58_v31 }
 0x1f1   :  { %v72_v32 = vld [vmem:[#allocation3] sm:$0xff] }
 0x1f2   :  { %93 = vlog2.f32 %v72_v32 }
 0x1f8   :  { %v94_v33 = vpop.eup %93 }
 0x1f9   :  { %v74_v34 = vmul.f32 0.6931472, %v94_v33 }
 0x1fb   :  { %v75_v36 = vadd.f32 %v74_v34, %v71_v35 }
 0x1fd   :  { %v77_v38 = vsub.f32 %v75_v36, %v76_v37 }
 0x1ff   :  { %78 = vst.msk [vmem:[%s134_s2] sm:$0xff] %vm15_vm0, %v77_v38 }

</bundles_post_ra>
